<compile_context>
chip_gen: v7x
topology: tpu7x:2x2x1
jax: 0.10.0
libtpu: 0.0.40
codegen_flags: <defaults>
</compile_context>

<pallas_src>
import functools

import jax
import jax.numpy as jnp
from jax.experimental import pallas as pl
from jax.experimental.pallas import tpu as pltpu

LANE = 128      # TPU lane width: pad hidden/output feature dims to a multiple.
SUBLANE = 8     # f32 sublane width: batch tiles are a multiple of this.


def _round_up(n: int, m: int) -> int:
    return ((n + m - 1) // m) * m


# ---------------------------------------------------------------------------
# Kernel: one batch tile of  relu(relu(x@W1+b1)@W2+b2)@W3+b3
#   x_ref   : (tb, in_dims)  f32   (cast to bf16 here, not in the wrapper)
#   w1_ref  : (in_dims, HP)  bf16
#   w23_ref : (2, HP, HP)    bf16  ([0]=W2, [1]=W3, zero padded -> exact)
#   b_ref   : (3, HP)        f32   (packed biases, zero padded)
#   out_ref : (tb, n_actions) f32
# ---------------------------------------------------------------------------
def _dqn_kernel(x_ref, w1_ref, w23_ref, b_ref, out_ref):
    dt = w1_ref.dtype
    # fc1 + ReLU   (bf16 MXU operands, f32 accumulation; epilogue in f32)
    h1 = jnp.dot(x_ref[...].astype(dt), w1_ref[...],
                 preferred_element_type=jnp.float32)
    h1 = jnp.maximum(h1 + b_ref[0:1, :], 0.0)
    # fc2 + ReLU
    h2 = jnp.dot(h1.astype(dt), w23_ref[0],
                 preferred_element_type=jnp.float32)
    h2 = jnp.maximum(h2 + b_ref[1:2, :], 0.0)
    # fc3 (Q-values, no activation); store only the real action columns.
    q = jnp.dot(h2.astype(dt), w23_ref[1],
                preferred_element_type=jnp.float32)
    q = q + b_ref[2:3, :]
    out_ref[...] = q[:, : out_ref.shape[-1]].astype(out_ref.dtype)


# ---------------------------------------------------------------------------
# One-time parameter prep: pad all hidden/output dims to a common HP (multiple
# of 128), cast weights to bf16, pack W2/W3 into one array and biases into one.
# Zero padding is exact: padded weight cols get zero bias, ReLU(0)=0 propagates
# zeros, and padded weight rows only ever multiply those zero activations.
# ---------------------------------------------------------------------------
def prepare_params(params, compute_dtype=jnp.bfloat16):
    w1, b1, w2, b2, w3, b3 = params
    in_dims = w1.shape[0]
    hp = _round_up(max(w1.shape[1], w2.shape[1], w3.shape[1]), LANE)

    def pad_w(w, rows, cols):
        return jnp.pad(w, ((0, rows - w.shape[0]),
                           (0, cols - w.shape[1]))).astype(compute_dtype)

    w1p = pad_w(w1, in_dims, hp)                                  # (in_dims, HP)
    w23p = jnp.stack([pad_w(w2, hp, hp), pad_w(w3, hp, hp)], 0)   # (2, HP, HP)

    def pad_b(b):
        b = jnp.reshape(b, (1, -1)).astype(jnp.float32)
        return jnp.pad(b, ((0, 0), (0, hp - b.shape[1])))

    bpack = jnp.concatenate([pad_b(b1), pad_b(b2), pad_b(b3)], axis=0)  # (3, HP)
    return w1p, w23p, bpack


# ---------------------------------------------------------------------------
# Forward wrapper
# ---------------------------------------------------------------------------
@functools.partial(jax.jit, static_argnames=("n_actions", "batch_tile"))
def dqn_forward(x, w1p, w23p, bpack, *, n_actions, batch_tile=1024):
    """Fused MLP forward. x: [B, input_dims] (any float dtype).
    Returns f32 Q-values [B, n_actions]."""
    x = x.astype(jnp.float32)          # mirrors state.float(); no-op for f32 input
    B, in_dims = x.shape
    assert w1p.shape[0] == in_dims, "x feature dim must match prepared w1 rows"

    # Balanced batch tiles: as few steps as possible under the cap, rows split
    # evenly so the last tile isn't mostly padding.
    n_tiles = pl.cdiv(B, batch_tile)
    if n_tiles == 1 and B >= 512:
        n_tiles = 2                    # keep both v7x TensorCores busy
    tb = _round_up(pl.cdiv(B, n_tiles), SUBLANE)
    n_tiles = pl.cdiv(B, tb)

    return pl.pallas_call(
        _dqn_kernel,
        out_shape=jax.ShapeDtypeStruct((B, n_actions), jnp.float32),
        grid=(n_tiles,),
        in_specs=[
            pl.BlockSpec((tb, in_dims), lambda i: (i, 0)),     # x: tiled over batch
            pl.BlockSpec(w1p.shape, lambda i: (0, 0)),         # weights/biases map to
            pl.BlockSpec(w23p.shape, lambda i: (0, 0, 0)),     #   the same block every
            pl.BlockSpec(bpack.shape, lambda i: (0, 0)),       #   step -> VMEM-resident
        ],
        out_specs=pl.BlockSpec((tb, n_actions), lambda i: (i, 0)),
        compiler_params=pltpu.CompilerParams(
            # Batch steps are independent -> shard across both TCs on v7x.
            dimension_semantics=("parallel",),
        ),
    )(x, w1p, w23p, bpack)


# ---------------------------------------------------------------------------
# Param init matching nn.Linear (weights stored pre-transposed as [in, out])
# ---------------------------------------------------------------------------
def init_params(key, input_dims, fc1_dims, fc2_dims, n_actions):
    ks = jax.random.split(key, 6)

    def lin(kw, kb, fan_in, fan_out):
        bound = 1.0 / jnp.sqrt(fan_in)
        w = jax.random.uniform(kw, (fan_in, fan_out), jnp.float32, -bound, bound)
        b = jax.random.uniform(kb, (1, fan_out), jnp.float32, -bound, bound)
        return w, b

    w1, b1 = lin(ks[0], ks[1], input_dims, fc1_dims)
    w2, b2 = lin(ks[2], ks[3], fc1_dims, fc2_dims)
    w3, b3 = lin(ks[4], ks[5], fc2_dims, n_actions)
    return (w1, b1, w2, b2, w3, b3)


# TODO(synk): Adam optimiser / MSELoss / checkpoint I/O from DeepQNet are training
# utilities, not part of the forward pass, and are not translated.

if __name__ == "__main__":
    # Shapes consistent with DeepQNet(input_dims=(16,), fc1=32, fc2=32, n_actions=4)
    B, IN, FC1, FC2, NA = 8, 16, 32, 32, 4

    key = jax.random.PRNGKey(0)
    k_x, k_p, k_x2, k_x3 = jax.random.split(key, 4)
    params = init_params(k_p, IN, FC1, FC2, NA)
    w1p, w23p, bpack = prepare_params(params, compute_dtype=jnp.bfloat16)

    def ref_bf16(x, params):
        # Mirrors the kernel numerics: bf16 MXU operands, f32 accumulate + epilogue.
        w1, b1, w2, b2, w3, b3 = params
        h = jnp.dot(x.astype(jnp.bfloat16), w1.astype(jnp.bfloat16),
                    preferred_element_type=jnp.float32)
        h = jnp.maximum(h + b1, 0.0)
        h = jnp.dot(h.astype(jnp.bfloat16), w2.astype(jnp.bfloat16),
                    preferred_element_type=jnp.float32)
        h = jnp.maximum(h + b2, 0.0)
        q = jnp.dot(h.astype(jnp.bfloat16), w3.astype(jnp.bfloat16),
                    preferred_element_type=jnp.float32)
        return q + b3

    def ref_f32(x, params):
        w1, b1, w2, b2, w3, b3 = params
        h = jnp.maximum(x @ w1 + b1, 0.0)
        h = jnp.maximum(h @ w2 + b2, 0.0)
        return h @ w3 + b3

    # --- small single-tile case (tb=8, one grid step) ---
    state = jax.random.normal(k_x, (B, IN), dtype=jnp.float32)
    actions = jax.block_until_ready(
        dqn_forward(state, w1p, w23p, bpack, n_actions=NA))
    assert actions.shape == (B, NA)
    assert jnp.allclose(actions, ref_bf16(state, params), atol=2e-3, rtol=2e-3)
    assert jnp.allclose(actions, ref_f32(state, params), atol=5e-2, rtol=5e-2)

    # --- replay-buffer batch just above a sublane multiple: one 304-row tile,
    #     ragged trailing rows masked by Pallas ---
    B2 = 300
    state2 = jax.random.normal(k_x2, (B2, IN), dtype=jnp.float32)
    actions2 = jax.block_until_ready(
        dqn_forward(state2, w1p, w23p, bpack, n_actions=NA))
    assert actions2.shape == (B2, NA)
    assert jnp.allclose(actions2, ref_bf16(state2, params), atol=2e-3, rtol=2e-3)

    # --- large batch: forced >=2 balanced tiles (v7x dual-TC path) + ragged block ---
    B3 = 600
    state3 = jax.random.normal(k_x3, (B3, IN), dtype=jnp.float32)
    actions3 = jax.block_until_ready(
        dqn_forward(state3, w1p, w23p, bpack, n_actions=NA))
    assert actions3.shape == (B3, NA)
    assert jnp.allclose(actions3, ref_bf16(state3, params), atol=2e-3, rtol=2e-3)

    print("KERNEL_OK")
</pallas_src>

<mosaic_0001>
module attributes {stable_mosaic.version = 11 : i64} {
  func.func @_dqn_kernel(%arg0: i32, %arg1: memref<8x16xf32, #tpu.memory_space<vmem>>, %arg2: memref<16x128xbf16, #tpu.memory_space<vmem>>, %arg3: memref<2x128x128xbf16, #tpu.memory_space<vmem>>, %arg4: memref<3x128xf32, #tpu.memory_space<vmem>>, %arg5: memref<8x4xf32, #tpu.memory_space<vmem>>) attributes {dimension_semantics = [#tpu.dimension_semantics<parallel>], iteration_bounds = array<i64: 1>, scalar_prefetch = 0 : i64, scratch_operands = 0 : i64, tpu.core_type = #tpu.core_type<tc>, window_params = [{transform_indices = @transform_0, window_bounds = array<i64: 8, 16>}, {pipeline_mode = #tpu.pipeline_mode<synchronous>, transform_indices = @transform_1, window_bounds = array<i64: 16, 128>}, {pipeline_mode = #tpu.pipeline_mode<synchronous>, transform_indices = @transform_2, window_bounds = array<i64: 2, 128, 128>}, {pipeline_mode = #tpu.pipeline_mode<synchronous>, transform_indices = @transform_3, window_bounds = array<i64: 3, 128>}, {transform_indices = @transform_4, window_bounds = array<i64: 8, 4>}]} {
    %c0 = arith.constant 0 : index
    %c0_0 = arith.constant 0 : index
    %0 = vector.load %arg1[%c0, %c0_0] : memref<8x16xf32, #tpu.memory_space<vmem>>, vector<8x16xf32>
    %1 = arith.truncf %0 : vector<8x16xf32> to vector<8x16xbf16>
    %c0_1 = arith.constant 0 : index
    %c0_2 = arith.constant 0 : index
    %2 = vector.load %arg2[%c0_1, %c0_2] : memref<16x128xbf16, #tpu.memory_space<vmem>>, vector<16x128xbf16>
    %cst = arith.constant dense<0.000000e+00> : vector<8x128xf32>
    %3 = tpu.matmul %1, %2, %cst {dimension_numbers = #tpu.dot_dimension_numbers<[1], [0], [0], [1], [0, 0, 1, 1], [], []>} : vector<8x16xbf16>, vector<16x128xbf16>, vector<8x128xf32> -> vector<8x128xf32>
    %c0_3 = arith.constant 0 : index
    %c0_4 = arith.constant 0 : index
    %4 = vector.load %arg4[%c0_3, %c0_4] : memref<3x128xf32, #tpu.memory_space<vmem>>, vector<1x128xf32>
    %5 = vector.broadcast %4 : vector<1x128xf32> to vector<8x128xf32>
    %6 = arith.addf %3, %5 : vector<8x128xf32>
    %cst_5 = arith.constant 0.000000e+00 : f32
    %7 = vector.broadcast %cst_5 : f32 to vector<8x128xf32>
    %8 = arith.maximumf %6, %7 : vector<8x128xf32>
    %9 = arith.truncf %8 : vector<8x128xf32> to vector<8x128xbf16>
    %c0_6 = arith.constant 0 : index
    %c0_7 = arith.constant 0 : index
    %c0_8 = arith.constant 0 : index
    %10 = vector.load %arg3[%c0_6, %c0_7, %c0_8] : memref<2x128x128xbf16, #tpu.memory_space<vmem>>, vector<1x128x128xbf16>
    %11 = vector.shape_cast %10 : vector<1x128x128xbf16> to vector<128x128xbf16>
    %cst_9 = arith.constant dense<0.000000e+00> : vector<8x128xf32>
    %12 = tpu.matmul %9, %11, %cst_9 {dimension_numbers = #tpu.dot_dimension_numbers<[1], [0], [0], [1], [0, 0, 1, 1], [], []>} : vector<8x128xbf16>, vector<128x128xbf16>, vector<8x128xf32> -> vector<8x128xf32>
    %c1 = arith.constant 1 : index
    %c0_10 = arith.constant 0 : index
    %13 = vector.load %arg4[%c1, %c0_10] : memref<3x128xf32, #tpu.memory_space<vmem>>, vector<1x128xf32>
    %14 = vector.broadcast %13 : vector<1x128xf32> to vector<8x128xf32>
    %15 = arith.addf %12, %14 : vector<8x128xf32>
    %cst_11 = arith.constant 0.000000e+00 : f32
    %16 = vector.broadcast %cst_11 : f32 to vector<8x128xf32>
    %17 = arith.maximumf %15, %16 : vector<8x128xf32>
    %18 = arith.truncf %17 : vector<8x128xf32> to vector<8x128xbf16>
    %c1_12 = arith.constant 1 : index
    %c0_13 = arith.constant 0 : index
    %c0_14 = arith.constant 0 : index
    %19 = vector.load %arg3[%c1_12, %c0_13, %c0_14] : memref<2x128x128xbf16, #tpu.memory_space<vmem>>, vector<1x128x128xbf16>
    %20 = vector.shape_cast %19 : vector<1x128x128xbf16> to vector<128x128xbf16>
    %cst_15 = arith.constant dense<0.000000e+00> : vector<8x128xf32>
    %21 = tpu.matmul %18, %20, %cst_15 {dimension_numbers = #tpu.dot_dimension_numbers<[1], [0], [0], [1], [0, 0, 1, 1], [], []>} : vector<8x128xbf16>, vector<128x128xbf16>, vector<8x128xf32> -> vector<8x128xf32>
    %c2 = arith.constant 2 : index
    %c0_16 = arith.constant 0 : index
    %22 = vector.load %arg4[%c2, %c0_16] : memref<3x128xf32, #tpu.memory_space<vmem>>, vector<1x128xf32>
    %23 = vector.broadcast %22 : vector<1x128xf32> to vector<8x128xf32>
    %24 = arith.addf %21, %23 : vector<8x128xf32>
    %25 = vector.extract_strided_slice %24 {offsets = [0, 0], sizes = [8, 4], strides = [1, 1]} : vector<8x128xf32> to vector<8x4xf32>
    %c0_17 = arith.constant 0 : index
    %c0_18 = arith.constant 0 : index
    %26 = vector.load %arg5[%c0_17, %c0_18] : memref<8x4xf32, #tpu.memory_space<vmem>>, vector<8x4xf32>
    tpu.vector_store %arg5[%c0_17, %c0_18], %25 {strides = array<i32>} : memref<8x4xf32, #tpu.memory_space<vmem>>, vector<8x4xf32>,
    return
  }
  func.func @transform_0(%arg0: i32) -> (i32, i32) {
    %c0_i32 = arith.constant 0 : i32
    %c0_i32_0 = arith.constant 0 : i32
    return %arg0, %c0_i32 : i32, i32
  }
  func.func @transform_1(%arg0: i32) -> (i32, i32) {
    %c0_i32 = arith.constant 0 : i32
    %c0_i32_0 = arith.constant 0 : i32
    %c0_i32_1 = arith.constant 0 : i32
    return %c0_i32, %c0_i32_0 : i32, i32
  }
  func.func @transform_2(%arg0: i32) -> (i32, i32, i32) {
    %c0_i32 = arith.constant 0 : i32
    %c0_i32_0 = arith.constant 0 : i32
    %c0_i32_1 = arith.constant 0 : i32
    %c0_i32_2 = arith.constant 0 : i32
    return %c0_i32, %c0_i32_0, %c0_i32_1 : i32, i32, i32
  }
  func.func @transform_3(%arg0: i32) -> (i32, i32) {
    %c0_i32 = arith.constant 0 : i32
    %c0_i32_0 = arith.constant 0 : i32
    %c0_i32_1 = arith.constant 0 : i32
    return %c0_i32, %c0_i32_0 : i32, i32
  }
  func.func @transform_4(%arg0: i32) -> (i32, i32) {
    %c0_i32 = arith.constant 0 : i32
    %c0_i32_0 = arith.constant 0 : i32
    return %arg0, %c0_i32 : i32, i32
  }
}

</mosaic_0001>

<bundles_post_ra>
// kernel: dqn_forward.1
= control target key start
LH: loop header
LB: loop body
LE: loop exit
PB: predicated region body
PF: predicated region fallthrough
CT: control target
= control target key end

     0   :  { %9 = vsyncpa [#allocation3], 0  ;;  %s634_s0 = inlined_call_operand.hbm [shape: f32[8,16], index: 0, kind: input, shape index: {}]   ;;  %s635_s1 = inlined_call_operand.hbm [shape: bf16[16,128], index: 1, kind: input, shape index: {}]   ;;  %s636_s2 = inlined_call_operand.hbm [shape: bf16[2,128,128], index: 2, kind: input, shape index: {}]   ;;  %s637_s3 = inlined_call_operand.vmem [shape: f32[3,128], index: 3, kind: input, shape index: {}]   ;;  %s638_s4 = inlined_call_operand.vmem [shape: f32[8,4], index: 4, kind: output, shape index: {}]  }
   0x1   :  { %10 = vsyncpa [#allocation5], 0  ;;  %s528_s15 = smov [#allocation4]   ;;  %s458_s19 = scalar_lea.hbm %s635_s1, 128 }
   0x2   :  { %s26_s16 = sshll.u32 %s528_s15, 4  ;;  %p459_p0 = scmp.ne.s32.totalorder %s635_s1, %s458_s19  ;;  %s27_s16 = int_to_ptr.vmem [resolvable:$true] %s26_s16 }
   0x3   :  { %p462_p1 = scmp.lt.u32.totalorder %s458_s19, %s635_s1 }
   0x5   :  { %p464_p2 = pnand %p462_p1, %p459_p0 }
   0x7   :  { %467 = shalt.err (!%p464_p2)
}
   0x8   :  { %s468_s24 = scalar_lea.vmem %s27_s16, 128  ;;  %p473_p4 = scmp.lt.s32.totalorder %s27_s16, %s27_s16 }
   0x9   :  { %p469_p3 = scmp.ne.s32.totalorder %s27_s16, %s468_s24  ;;  %p474_p5 = scmp.lt.s32.totalorder %s468_s24, %s468_s24 }
   0xb   :  { %p475_p6 = por %p474_p5, %p473_p4 }
   0xd   :  { %p476_p7 = pnand %p475_p6, %p469_p3 }
   0xf   :  { %479 = shalt.err (!%p476_p7)
}
  0x10   :  { %s529_s25 = smov 64   ;;  %s530_s26 = smov 4  }
  0x11   :  { %32 = dma.hbm_to_vmem [thread:$0]  %s635_s1, 128, %s27_s16, [#allocation5], %s529_s25, %s529_s25, %s530_s26  }
  0x12   :  { %s531_s29 = smov [#allocation2]   ;;  %s532_s5 = smov [#allocation6]  }
  0x13   :  { %s17_s30 = sshll.u32 %s531_s29, 4  ;;  %s38_s6 = sshll.u32 %s532_s5, 4  ;;  %s18_s30 = int_to_ptr.vmem [resolvable:$true] %s17_s30  ;;  %s39_s6 = int_to_ptr.vmem [resolvable:$true] %s38_s6 }
  0x14   :  { %s480_s9 = scalar_lea.hbm %s634_s0, 128 }
  0x15   :  { %p481_p8 = scmp.ne.s32.totalorder %s634_s0, %s480_s9  ;;  %p484_p9 = scmp.lt.u32.totalorder %s480_s9, %s634_s0 }
  0x17   :  { %p486_p10 = pnand %p484_p9, %p481_p8 }
  0x19   :  { %489 = shalt.err (!%p486_p10)
}
  0x1a   :  { %s490_s1 = scalar_lea.vmem %s18_s30, 128  ;;  %p495_p12 = scmp.lt.s32.totalorder %s18_s30, %s18_s30 }
  0x1b   :  { %p491_p11 = scmp.ne.s32.totalorder %s18_s30, %s490_s1  ;;  %p496_p13 = scmp.lt.s32.totalorder %s490_s1, %s490_s1 }
  0x1d   :  { %p497_p0 = por %p496_p13, %p495_p12 }
  0x1f   :  { %p498_p1 = pnand %p497_p0, %p491_p11 }
  0x21   :  { %501 = shalt.err (!%p498_p1)
}
  0x22   :  { %20 = dma.hbm_to_vmem [thread:$0]  %s634_s0, 128, %s18_s30, [#allocation3]  }
  0x23   :  { %s502_s18 = scalar_lea.hbm %s636_s2, 2048 }
  0x24   :  { %p503_p2 = scmp.ne.s32.totalorder %s636_s2, %s502_s18  ;;  %p506_p3 = scmp.lt.u32.totalorder %s502_s18, %s636_s2 }
  0x26   :  { %p508_p4 = pnand %p506_p3, %p503_p2 }
  0x28   :  { %511 = shalt.err (!%p508_p4)
}
  0x29   :  { %s512_s23 = scalar_lea.vmem %s39_s6, 2048  ;;  %p517_p6 = scmp.lt.s32.totalorder %s39_s6, %s39_s6 }
  0x2a   :  { %p513_p5 = scmp.ne.s32.totalorder %s39_s6, %s512_s23  ;;  %p518_p7 = scmp.lt.s32.totalorder %s512_s23, %s512_s23 }
  0x2c   :  { %p519_p8 = por %p518_p7, %p517_p6 }
  0x2e   :  { %p520_p9 = pnand %p519_p8, %p513_p5 }
  0x30   :  { %523 = shalt.err (!%p520_p9)
}
  0x31   :  { %44 = dma.hbm_to_vmem [thread:$0]  %s636_s2, 2048, %s39_s6, [#allocation5], %s529_s25, %s529_s25, %s530_s26  }
  0x32   :  { %524 = dma.done.wait [#allocation3], 128  }
  0x33   :  { %525 = vsyncadd [#allocation3], 4294967168 }
  0x34   :  { %526 = dma.done.wait [#allocation5], 2176  }
  0x35   :  { %527 = vsyncadd [#allocation5], 4294965120  ;;  %v533_v0 = vmov 0.0   ;;  %vm534_vm0 = vmmov 0   ;;  %v441_v1 = vld [vmem:[#allocation4] sm:$0xff]   ;;  %v57_v2 = vld [vmem:[#allocation2] sm:$0xff] }
  0x36   :  { %388 = vmatprep.subr.bf16.mxu0 %v533_v0  ;;  %390 = vmatprep.mubr.msk.bf16.mxu0 %vm534_vm0, %v533_v0  ;;  %v58_v3 = vpack.c.bf16 %v57_v2, %v57_v2  ;;  %vm72_vm1 = vcmask 130048   ;;  %v442_v4 = vld [vmem:[#allocation6] sm:$0xff]   ;;  %v443_v5 = vld [vmem:[#allocation6 + $0x8] sm:$0xff]   ;;  %v444_v6 = vld [vmem:[#allocation6 + $0x10] sm:$0xff]   ;;  %vm339_vm2 = vcmask 31744  }
  0x37   :  { %394 = vmatprep.subr.bf16.mxu1 %v533_v0  ;;  %410 = vmatprep.mubr.msk.bf16.mxu1 %vm534_vm0, %v533_v0  ;;  %v445_v7 = vld [vmem:[#allocation6 + $0x18] sm:$0xff]   ;;  %v446_v8 = vld [vmem:[#allocation6 + $0x20] sm:$0xff]   ;;  %v447_v9 = vld [vmem:[#allocation6 + $0x28] sm:$0xff]  }
  0x38   :  { %389 = vmatpush3.bf16.msra.mxu0 %v441_v1  ;;  %395 = vmatpush3.bf16.msra.mxu1 %v442_v4  ;;  %v448_v10 = vld [vmem:[#allocation6 + $0x30] sm:$0xff]   ;;  %v449_v11 = vld [vmem:[#allocation6 + $0x38] sm:$0xff]   ;;  %v450_v12 = vld [vmem:[#allocation6 + $0x40] sm:$0xff]  }
  0x39   :  { %414 = vmatprep.subr.bf16.mxu0 %v533_v0  ;;  %396 = vmatprep.subr.bf16.mxu1 %v533_v0  ;;  %v451_v13 = vld [vmem:[#allocation6 + $0x48] sm:$0xff]   ;;  %v452_v14 = vld [vmem:[#allocation6 + $0x50] sm:$0xff]   ;;  %v453_v15 = vld [vmem:[#allocation6 + $0x58] sm:$0xff]  }
  0x3a   :  { %v454_v16 = vld [vmem:[#allocation6 + $0x60] sm:$0xff]   ;;  %v455_v17 = vld [vmem:[#allocation6 + $0x68] sm:$0xff]   ;;  %v456_v26 = vld [vmem:[#allocation6 + $0x70] sm:$0xff]  }
  0x3b   :  { %391 = vmatmul.mubr.msk.bf16.vlgmr.msra.gmra.mrb[0].mxu0 %vm72_vm1, %v58_v3  ;;  %v347_v18 = vld [vmem:[%s637_s3] ss:$0 sm:$0xff]  ;;  %v457_v27 = vld [vmem:[#allocation6 + $0x78] sm:$0xff]   ;;  %v350_v28 = vld [vmem:[%s637_s3 + $0x1] ss:$0 sm:$0xff] }
  0x3c   :  { %430 = vmatprep.mubr.msk.bf16.mxu0 %vm534_vm0, %v533_v0  ;;  %397 = vmatpush3.bf16.msra.mxu1 %v443_v5  ;;  %v359_v36 = vld [vmem:[%s637_s3 + $0x2] ss:$0 sm:$0xff] }
  0x3d   :  { %398 = vmatprep.subr.bf16.mxu1 %v533_v0  ;;  %415 = vmatpush3.bf16.msra.mxu0 %v450_v12 }
  0x3e   :  { %416 = vmatprep.subr.bf16.mxu0 %v533_v0 }
  0x40   :  { %399 = vmatpush3.bf16.msra.mxu1 %v444_v6 }
  0x41   :  { %400 = vmatprep.subr.bf16.mxu1 %v533_v0  ;;  %417 = vmatpush3.bf16.msra.mxu0 %v451_v13 }
  0x42   :  { %418 = vmatprep.subr.bf16.mxu0 %v533_v0 }
  0x44   :  { %401 = vmatpush3.bf16.msra.mxu1 %v445_v7 }
  0x45   :  { %402 = vmatprep.subr.bf16.mxu1 %v533_v0  ;;  %419 = vmatpush3.bf16.msra.mxu0 %v452_v14 }
  0x46   :  { %420 = vmatprep.subr.bf16.mxu0 %v533_v0 }
  0x48   :  { %403 = vmatpush3.bf16.msra.mxu1 %v446_v8 }
  0x49   :  { %404 = vmatprep.subr.bf16.mxu1 %v533_v0  ;;  %421 = vmatpush3.bf16.msra.mxu0 %v453_v15 }
  0x4a   :  { %422 = vmatprep.subr.bf16.mxu0 %v533_v0 }
  0x4c   :  { %405 = vmatpush3.bf16.msra.mxu1 %v447_v9 }
  0x4d   :  { %406 = vmatprep.subr.bf16.mxu1 %v533_v0  ;;  %423 = vmatpush3.bf16.msra.mxu0 %v454_v16 }
  0x4e   :  { %424 = vmatprep.subr.bf16.mxu0 %v533_v0 }
  0x50   :  { %407 = vmatpush3.bf16.msra.mxu1 %v448_v10 }
  0x51   :  { %408 = vmatprep.subr.bf16.mxu1 %v533_v0  ;;  %425 = vmatpush3.bf16.msra.mxu0 %v455_v17 }
  0x52   :  { %426 = vmatprep.subr.bf16.mxu0 %v533_v0 }
  0x54   :  { %409 = vmatpush3.bf16.msra.mxu1 %v449_v11 }
  0x55   :  { %427 = vmatpush3.bf16.msra.mxu0 %v456_v26 }
  0x56   :  { %428 = vmatprep.subr.bf16.mxu0 %v533_v0 }
  0x59   :  { %429 = vmatpush3.bf16.msra.mxu0 %v457_v27 }
 0x10e   :  { %v110_v19 = vpop.f32.mrb[0].mxu0 }
 0x10f   :  { %v111_v20 = vadd.f32 %v347_v18, %v110_v19  ;;  %v392_v21 = vpop.f32.mrb[1].mxu0 }
 0x110   :  { %v113_v22 = vpop.f32.mrb[2].mxu0 }
 0x111   :  { %v116_v23 = vmax.f32 %v111_v20, 0.0  ;;  %v393_v24 = vpop.f32.mrb[3].mxu0 }
 0x113   :  { %v117_v25 = vpack.c.bf16 %v116_v23, %v116_v23 }
 0x115   :  { %411 = vmatmul.mubr.bf16.vlgmr.msra.gmra.mrb[0].mxu1 %v117_v25 }
 0x1e8   :  { %v221_v29 = vpop.f32.mrb[0].mxu1 }
 0x1e9   :  { %v222_v30 = vadd.f32 %v350_v28, %v221_v29  ;;  %v412_v31 = vpop.f32.mrb[1].mxu1 }
 0x1ea   :  { %v224_v32 = vpop.f32.mrb[2].mxu1 }
 0x1eb   :  { %v227_v33 = vmax.f32 %v222_v30, 0.0  ;;  %v413_v34 = vpop.f32.mrb[3].mxu1 }
 0x1ed   :  { %v228_v35 = vpack.c.bf16 %v227_v33, %v227_v33 }
 0x1ef   :  { %431 = vmatmul.mubr.bf16.vlgmr.msra.gmra.mrb[4].mxu0 %v228_v35 }
 0x2c2   :  { %v333_v37 = vpop.f32.mrb[4].mxu0 }
 0x2c3   :  { %v334_v38 = vadd.f32 %v359_v36, %v333_v37  ;;  %v432_v39 = vpop.f32.mrb[5].mxu0 }
 0x2c4   :  { %v336_v40 = vpop.f32.mrb[6].mxu0 }
 0x2c5   :  { %340 = vst.msk [vmem:[%s638_s4] sm:$0xff] %vm339_vm2, %v334_v38  ;;  %v433_v41 = vpop.f32.mrb[7].mxu0 }
 0x2c6   :  { %345 = vsyncpa [#allocation3], 1 }
 0x2c7   :  { %346 = vsyncpa [#allocation5], 1 }

</bundles_post_ra>
